<compile_context>
chip_gen: v5e
topology: v5e:2x2
jax: 0.10.0
libtpu: 0.0.40
codegen_flags: <defaults>
</compile_context>

<pallas_src>
import math
import jax
import jax.numpy as jnp
from jax.experimental import pallas as pl
from jax.experimental.pallas import tpu as pltpu


def _round_up(a: int, m: int) -> int:
    return (a + m - 1) // m * m


def _cdiv(a: int, m: int) -> int:
    return (a + m - 1) // m


def _make_kernel(TB, C_in, Lx, K, NK, LC, n_chunks, L_out, OUT_pad):
    def kernel(x_ref, wconv_ref, wlin_ref, blin_ref, out_ref):
        # x_ref    : (TB, C_in, Lx)  bf16  channels on sublanes, time on lanes (compact layout)
        # wconv_ref: (K, NK, C_in)   bf16  conv weight, one (NK, C_in) tap per k
        # wlin_ref : (NK, OUT_pad)   bf16  linear weight (zero-padded lanes)
        # blin_ref : (1, OUT_pad)    f32   linear bias
        # out_ref  : (TB, OUT_pad)   f32   lane-dense output slab
        w_all = wconv_ref[...]                                   # (K, NK, C_in)
        # Hoisted broadcast of the (tiny) conv taps across the batch tile so the conv becomes a
        # batched MXU matmul (same 'bqk,bkd->bqd' pattern as flash attention's p@v).
        w_b = [jnp.broadcast_to(w_all[k], (TB, NK, C_in)) for k in range(K)]

        # Running max over temporal chunks: live f32 state is only (TB, NK).
        # TODO(synk): for very long sequences switch this static chunk loop to lax.fori_loop
        #             (static version keeps all lane offsets compile-time constants).
        pooled = jnp.full((TB, NK), -jnp.inf, dtype=jnp.float32)
        for ci in range(n_chunks):
            t0 = ci * LC
            acc = jnp.zeros((TB, NK, LC), dtype=jnp.float32)
            for k in range(K):                                   # static unroll over conv taps
                x_k = x_ref[:, :, t0 + k: t0 + k + LC]           # (TB, C_in, LC) bf16
                acc = acc + jax.lax.dot_general(
                    w_b[k], x_k,
                    dimension_numbers=(((2,), (1,)), ((0,), (0,))),
                    preferred_element_type=jnp.float32)          # (TB, NK, LC) f32
            # Mask window positions past the valid conv output range before the max.
            t = t0 + jax.lax.broadcasted_iota(jnp.int32, (1, 1, LC), 2)
            acc = jnp.where(t < L_out, acc, -jnp.inf)
            pooled = jnp.maximum(pooled, jnp.max(acc, axis=-1))  # (TB, NK) f32

        # Dropout(p=0.2) is identity in eval/inference mode.
        # TODO(synk): training-mode dropout (random mask + 1/(1-p) scale) not implemented.
        logits = jnp.dot(pooled.astype(jnp.bfloat16), wlin_ref[...],
                         preferred_element_type=jnp.float32) + blin_ref[...]
        out_ref[...] = jax.nn.sigmoid(logits)

    return kernel


def cnn_forward(x, conv_w, lin_w, lin_b, *, outputdim):
    """x: (B, L, C_in) float (original PyTorch input layout, before the forward's permute);
       conv_w: (NK, C_in, K) (PyTorch Conv1d layout, bias=False); lin_w: (OUT, NK); lin_b: (OUT,).
       Returns squeeze(sigmoid(linear(maxpool(conv(x)))))."""
    B, L, C_in = x.shape
    NK, _, K = conv_w.shape
    L_out = L - K + 1
    assert L_out >= 1
    if not outputdim:
        # TODO(synk): outputdim=0 path (skip linear+sigmoid, return pooled) not built here.
        raise NotImplementedError("outputdim=0 path not implemented")
    OUT = lin_w.shape[0]

    SUB, LANE = 8, 128
    assert K - 1 <= LANE
    C_pad = _round_up(C_in, SUB)
    NK_pad = _round_up(NK, SUB)
    OUT_pad = _round_up(OUT, LANE)

    # Temporal chunking: per chunk only a (TB, NK, LC) f32 intermediate is live.
    LC = min(512, _round_up(L_out, LANE))
    n_chunks = _cdiv(L_out, LC)
    Lx = n_chunks * LC + LANE          # lane headroom so every k-shifted slice stays in-bounds

    # ---- batch tile from an explicit VMEM budget (double-buffered pipeline blocks + temps) ----
    bytes_per_row = (2 * C_pad * Lx * 2          # x block  (bf16) x2 buffers
                     + 2 * OUT_pad * 4           # out block (f32) x2 buffers
                     + 3 * NK_pad * LC * 4       # conv chunk accumulator + temps (f32)
                     + 2 * NK_pad * 4)           # running max / pooled
    VMEM_BUDGET = 12 * 1024 * 1024
    TB = max(SUB, min(512, (VMEM_BUDGET // bytes_per_row) // SUB * SUB))
    if B > SUB:                                  # v7x: keep >= 2 grid steps so both TCs get work
        TB = min(TB, _round_up(_cdiv(B, 2), SUB))
    TB = max(SUB, min(TB, _round_up(B, SUB)))
    B_pad = _round_up(B, TB)

    # ---- plain-JAX glue: cast to bf16 BEFORE relayout, permute (as torch does), pad ----
    xt = jnp.transpose(x.astype(jnp.bfloat16), (0, 2, 1))            # (B, C_in, L)
    x2 = jnp.pad(xt, ((0, B_pad - B), (0, 0), (0, Lx - L)))          # (B_pad, C_in, Lx) bf16

    # conv_w (NK, C_in, K) -> (K, NK, C_in): wconv[k, n, c] = conv_w[n, c, k]
    wconv = jnp.transpose(conv_w, (2, 0, 1)).astype(jnp.bfloat16)
    wlin = jnp.zeros((NK, OUT_pad), jnp.bfloat16).at[:, :OUT].set(lin_w.T.astype(jnp.bfloat16))
    blin = jnp.zeros((1, OUT_pad), jnp.float32).at[:, :OUT].set(lin_b.astype(jnp.float32))

    cost = pl.CostEstimate(
        flops=2 * B_pad * n_chunks * LC * K * NK * C_in + 2 * B_pad * NK * OUT_pad,
        transcendentals=B_pad * OUT_pad,
        bytes_accessed=(x2.size * 2 + wconv.size * 2 + wlin.size * 2
                        + blin.size * 4 + B_pad * OUT_pad * 4),
    )

    out = pl.pallas_call(
        _make_kernel(TB, C_in, Lx, K, NK, LC, n_chunks, L_out, OUT_pad),
        out_shape=jax.ShapeDtypeStruct((B_pad, OUT_pad), jnp.float32),
        grid_spec=pl.GridSpec(
            grid=(B_pad // TB,),
            in_specs=[
                pl.BlockSpec((TB, C_in, Lx), lambda i: (i, 0, 0)),
                pl.BlockSpec((K, NK, C_in), lambda i: (0, 0, 0)),
                pl.BlockSpec((NK, OUT_pad), lambda i: (0, 0)),
                pl.BlockSpec((1, OUT_pad), lambda i: (0, 0)),
            ],
            out_specs=pl.BlockSpec((TB, OUT_pad), lambda i: (i, 0)),
        ),
        compiler_params=pltpu.CompilerParams(
            dimension_semantics=("parallel",),
            vmem_limit_bytes=32 * 1024 * 1024),
        cost_estimate=cost,
    )(x2, wconv, wlin, blin)

    return jnp.squeeze(out[:B, :OUT])   # mirrors torch .squeeze()


def _reference_forward(x, conv_w, lin_w, lin_b):
    """Pure-JAX reference mirroring the PyTorch module (eval mode, f32)."""
    B, L, C_in = x.shape
    NK, _, K = conv_w.shape
    L_out = L - K + 1
    xt = jnp.transpose(x, (0, 2, 1)).astype(jnp.float32)   # (B, C_in, L)
    conv = sum(jnp.einsum('bcl,oc->bol', xt[:, :, k:k + L_out], conv_w[:, :, k])
               for k in range(K))                          # (B, NK, L_out)
    pooled = jnp.max(conv, axis=2)                         # (B, NK)
    logits = pooled @ lin_w.T + lin_b
    return jnp.squeeze(jax.nn.sigmoid(logits))


def _init_params(key, in_channels, kernel_size, number_of_kernel, outputdim):
    k_conv, k_lw, k_lb = jax.random.split(key, 3)
    # Xavier-uniform for Conv1d weight (NK, C_in, K): fan_in = C_in*K, fan_out = NK*K
    fan_in = in_channels * kernel_size
    fan_out = number_of_kernel * kernel_size
    bound = math.sqrt(6.0 / (fan_in + fan_out))
    conv_w = jax.random.uniform(k_conv, (number_of_kernel, in_channels, kernel_size),
                                minval=-bound, maxval=bound, dtype=jnp.float32)
    # PyTorch Linear default init: U(-1/sqrt(fan_in), 1/sqrt(fan_in))
    lb = 1.0 / math.sqrt(number_of_kernel)
    lin_w = jax.random.uniform(k_lw, (outputdim, number_of_kernel),
                               minval=-lb, maxval=lb, dtype=jnp.float32)
    lin_b = jax.random.uniform(k_lb, (outputdim,), minval=-lb, maxval=lb, dtype=jnp.float32)
    return conv_w, lin_w, lin_b


if __name__ == "__main__":
    # Small shapes consistent with the module's forward:
    # x: (batch=2, seq_len=16, in_channels=4); kernel_size=3; number_of_kernel=32; outputdim=2
    B, L, C_in = 2, 16, 4
    K, NK, OUT = 3, 32, 2

    key = jax.random.PRNGKey(0)
    k_x, k_p = jax.random.split(key)
    x = jax.random.normal(k_x, (B, L, C_in), dtype=jnp.float32)
    conv_w, lin_w, lin_b = _init_params(k_p, C_in, K, NK, OUT)

    y = cnn_forward(x, conv_w, lin_w, lin_b, outputdim=OUT)
    y = jax.block_until_ready(y)
    assert y.shape == (B, OUT)
    assert bool(jnp.all(jnp.isfinite(y)))

    y_ref = _reference_forward(x, conv_w, lin_w, lin_b)
    max_err = float(jnp.max(jnp.abs(y - y_ref)))
    assert max_err < 2e-2, f"mismatch vs reference: {max_err}"
    print("KERNEL_OK")
</pallas_src>

<mosaic_0001>
module attributes {stable_mosaic.version = 11 : i64} {
  func.func @kernel(%arg0: i32, %arg1: memref<8x4x256xbf16, #tpu.memory_space<vmem>>, %arg2: memref<3x32x4xbf16, #tpu.memory_space<vmem>>, %arg3: memref<32x128xbf16, #tpu.memory_space<vmem>>, %arg4: memref<1x128xf32, #tpu.memory_space<vmem>>, %arg5: memref<8x128xf32, #tpu.memory_space<vmem>>) attributes {dimension_semantics = [#tpu.dimension_semantics<parallel>], iteration_bounds = array<i64: 1>, scalar_prefetch = 0 : i64, scratch_operands = 0 : i64, tpu.core_type = #tpu.core_type<tc>, window_params = [{transform_indices = @transform_0, window_bounds = array<i64: 8, 4, 256>}, {pipeline_mode = #tpu.pipeline_mode<synchronous>, transform_indices = @transform_1, window_bounds = array<i64: 3, 32, 4>}, {pipeline_mode = #tpu.pipeline_mode<synchronous>, transform_indices = @transform_2, window_bounds = array<i64: 32, 128>}, {pipeline_mode = #tpu.pipeline_mode<synchronous>, transform_indices = @transform_3, window_bounds = array<i64: 1, 128>}, {transform_indices = @transform_4, window_bounds = array<i64: 8, 128>}]} {
    %c0 = arith.constant 0 : index
    %c0_0 = arith.constant 0 : index
    %c0_1 = arith.constant 0 : index
    %0 = vector.load %arg2[%c0, %c0_0, %c0_1] : memref<3x32x4xbf16, #tpu.memory_space<vmem>>, vector<3x32x4xbf16>
    %1 = vector.extract_strided_slice %0 {offsets = [0, 0, 0], sizes = [1, 32, 4], strides = [1, 1, 1]} : vector<3x32x4xbf16> to vector<1x32x4xbf16>
    %2 = vector.shape_cast %1 : vector<1x32x4xbf16> to vector<32x4xbf16>
    %3 = vector.shape_cast %2 : vector<32x4xbf16> to vector<1x32x4xbf16>
    %4 = vector.broadcast %3 : vector<1x32x4xbf16> to vector<8x32x4xbf16>
    %5 = vector.extract_strided_slice %0 {offsets = [1, 0, 0], sizes = [1, 32, 4], strides = [1, 1, 1]} : vector<3x32x4xbf16> to vector<1x32x4xbf16>
    %6 = vector.shape_cast %5 : vector<1x32x4xbf16> to vector<32x4xbf16>
    %7 = vector.shape_cast %6 : vector<32x4xbf16> to vector<1x32x4xbf16>
    %8 = vector.broadcast %7 : vector<1x32x4xbf16> to vector<8x32x4xbf16>
    %9 = vector.extract_strided_slice %0 {offsets = [2, 0, 0], sizes = [1, 32, 4], strides = [1, 1, 1]} : vector<3x32x4xbf16> to vector<1x32x4xbf16>
    %10 = vector.shape_cast %9 : vector<1x32x4xbf16> to vector<32x4xbf16>
    %11 = vector.shape_cast %10 : vector<32x4xbf16> to vector<1x32x4xbf16>
    %12 = vector.broadcast %11 : vector<1x32x4xbf16> to vector<8x32x4xbf16>
    %cst = arith.constant 0xFF800000 : f32
    %13 = vector.broadcast %cst : f32 to vector<8x32xf32>
    %cst_2 = arith.constant 0.000000e+00 : f32
    %14 = vector.broadcast %cst_2 : f32 to vector<8x32x128xf32>
    %c0_3 = arith.constant 0 : index
    %c0_4 = arith.constant 0 : index
    %c0_5 = arith.constant 0 : index
    %15 = vector.load %arg1[%c0_3, %c0_4, %c0_5] : memref<8x4x256xbf16, #tpu.memory_space<vmem>>, vector<8x4x128xbf16>
    %cst_6 = arith.constant dense<0.000000e+00> : vector<8x32x128xf32>
    %16 = tpu.matmul %4, %15, %cst_6 {dimension_numbers = #tpu.dot_dimension_numbers<[2], [1], [1], [2], [0, 0, 0, 1, 1, 2], [0], [0]>} : vector<8x32x4xbf16>, vector<8x4x128xbf16>, vector<8x32x128xf32> -> vector<8x32x128xf32>
    %17 = arith.addf %14, %16 : vector<8x32x128xf32>
    %c0_7 = arith.constant 0 : index
    %c0_8 = arith.constant 0 : index
    %c1 = arith.constant 1 : index
    %18 = vector.load %arg1[%c0_7, %c0_8, %c1] : memref<8x4x256xbf16, #tpu.memory_space<vmem>>, vector<8x4x128xbf16>
    %cst_9 = arith.constant dense<0.000000e+00> : vector<8x32x128xf32>
    %19 = tpu.matmul %8, %18, %cst_9 {dimension_numbers = #tpu.dot_dimension_numbers<[2], [1], [1], [2], [0, 0, 0, 1, 1, 2], [0], [0]>} : vector<8x32x4xbf16>, vector<8x4x128xbf16>, vector<8x32x128xf32> -> vector<8x32x128xf32>
    %20 = arith.addf %17, %19 : vector<8x32x128xf32>
    %c0_10 = arith.constant 0 : index
    %c0_11 = arith.constant 0 : index
    %c2 = arith.constant 2 : index
    %21 = vector.load %arg1[%c0_10, %c0_11, %c2] : memref<8x4x256xbf16, #tpu.memory_space<vmem>>, vector<8x4x128xbf16>
    %cst_12 = arith.constant dense<0.000000e+00> : vector<8x32x128xf32>
    %22 = tpu.matmul %12, %21, %cst_12 {dimension_numbers = #tpu.dot_dimension_numbers<[2], [1], [1], [2], [0, 0, 0, 1, 1, 2], [0], [0]>} : vector<8x32x4xbf16>, vector<8x4x128xbf16>, vector<8x32x128xf32> -> vector<8x32x128xf32>
    %23 = arith.addf %20, %22 : vector<8x32x128xf32>
    %24 = tpu.iota {dimensions = array<i32: 2>} : vector<1x1x128xi32>
    %c0_i32 = arith.constant 0 : i32
    %25 = vector.broadcast %c0_i32 : i32 to vector<1x1x128xi32>
    %26 = arith.addi %25, %24 : vector<1x1x128xi32>
    %c14_i32 = arith.constant 14 : i32
    %27 = vector.broadcast %c14_i32 : i32 to vector<1x1x128xi32>
    %28 = arith.cmpi slt, %26, %27 : vector<1x1x128xi32>
    %cst_13 = arith.constant 0xFF800000 : f32
    %29 = vector.shape_cast %28 : vector<1x1x128xi1> to vector<1x1x128xi1>
    %30 = vector.broadcast %29 : vector<1x1x128xi1> to vector<8x32x128xi1>
    %31 = vector.broadcast %cst_13 : f32 to vector<8x32x128xf32>
    %32 = arith.select %30, %23, %31 : vector<8x32x128xi1>, vector<8x32x128xf32>
    %cst_14 = arith.constant dense<0xFF800000> : vector<8x32xf32>
    %33 = vector.multi_reduction <maximumf>, %32, %cst_14 [2] : vector<8x32x128xf32> to vector<8x32xf32>
    %34 = arith.maximumf %13, %33 : vector<8x32xf32>
    %35 = arith.truncf %34 : vector<8x32xf32> to vector<8x32xbf16>
    %c0_15 = arith.constant 0 : index
    %c0_16 = arith.constant 0 : index
    %36 = vector.load %arg3[%c0_15, %c0_16] : memref<32x128xbf16, #tpu.memory_space<vmem>>, vector<32x128xbf16>
    %cst_17 = arith.constant dense<0.000000e+00> : vector<8x128xf32>
    %37 = tpu.matmul %35, %36, %cst_17 {dimension_numbers = #tpu.dot_dimension_numbers<[1], [0], [0], [1], [0, 0, 1, 1], [], []>} : vector<8x32xbf16>, vector<32x128xbf16>, vector<8x128xf32> -> vector<8x128xf32>
    %c0_18 = arith.constant 0 : index
    %c0_19 = arith.constant 0 : index
    %38 = vector.load %arg4[%c0_18, %c0_19] : memref<1x128xf32, #tpu.memory_space<vmem>>, vector<1x128xf32>
    %39 = vector.broadcast %38 : vector<1x128xf32> to vector<8x128xf32>
    %40 = arith.addf %37, %39 : vector<8x128xf32>
    %41 = arith.negf %40 : vector<8x128xf32>
    %42 = math.exp %41 : vector<8x128xf32>
    %cst_20 = arith.constant 1.000000e+00 : f32
    %43 = vector.broadcast %cst_20 : f32 to vector<8x128xf32>
    %44 = arith.addf %43, %42 : vector<8x128xf32>
    %45 = arith.divf %43, %44 : vector<8x128xf32>
    %c0_21 = arith.constant 0 : index
    %c0_22 = arith.constant 0 : index
    %46 = vector.load %arg5[%c0_21, %c0_22] : memref<8x128xf32, #tpu.memory_space<vmem>>, vector<8x128xf32>
    tpu.vector_store %arg5[%c0_21, %c0_22], %45 {strides = array<i32>} : memref<8x128xf32, #tpu.memory_space<vmem>>, vector<8x128xf32>,
    return
  }
  func.func @transform_0(%arg0: i32) -> (i32, i32, i32) {
    %c0_i32 = arith.constant 0 : i32
    %c0_i32_0 = arith.constant 0 : i32
    %c0_i32_1 = arith.constant 0 : i32
    return %arg0, %c0_i32, %c0_i32_0 : i32, i32, i32
  }
  func.func @transform_1(%arg0: i32) -> (i32, i32, i32) {
    %c0_i32 = arith.constant 0 : i32
    %c0_i32_0 = arith.constant 0 : i32
    %c0_i32_1 = arith.constant 0 : i32
    %c0_i32_2 = arith.constant 0 : i32
    return %c0_i32, %c0_i32_0, %c0_i32_1 : i32, i32, i32
  }
  func.func @transform_2(%arg0: i32) -> (i32, i32) {
    %c0_i32 = arith.constant 0 : i32
    %c0_i32_0 = arith.constant 0 : i32
    %c0_i32_1 = arith.constant 0 : i32
    return %c0_i32, %c0_i32_0 : i32, i32
  }
  func.func @transform_3(%arg0: i32) -> (i32, i32) {
    %c0_i32 = arith.constant 0 : i32
    %c0_i32_0 = arith.constant 0 : i32
    %c0_i32_1 = arith.constant 0 : i32
    return %c0_i32, %c0_i32_0 : i32, i32
  }
  func.func @transform_4(%arg0: i32) -> (i32, i32) {
    %c0_i32 = arith.constant 0 : i32
    %c0_i32_0 = arith.constant 0 : i32
    return %arg0, %c0_i32 : i32, i32
  }
}

</mosaic_0001>

<bundles_post_ra>
// kernel: tpu_custom_call.1
= control target key start
LH: loop header
LB: loop body
LE: loop exit
PB: predicated region body
PF: predicated region fallthrough
CT: control target
= control target key end

     0   :  { %s1822_s0 = inlined_call_operand.vmem [shape: bf16[8,4,256], index: 0, kind: input, shape index: {}]   ;;  %s1823_s1 = inlined_call_operand.vmem [shape: bf16[3,32,4], index: 1, kind: input, shape index: {}]   ;;  %s1824_s2 = inlined_call_operand.vmem [shape: bf16[32,128], index: 2, kind: input, shape index: {}]   ;;  %s1825_s3 = inlined_call_operand.vmem [shape: f32[1,128], index: 3, kind: input, shape index: {}]   ;;  %s1826_s4 = inlined_call_operand.hbm [shape: f32[8,128], index: 4, kind: output, shape index: {}]  }
   0x1   :  { %v39_v0 = vld [vmem:[%s1822_s0] sm:$0xf] }
   0x2   :  { %58 = vst [vmem:[#allocation1] ss:$4 sm:$0xff] %v39_v0 }
   0x3   :  { %9 = vsyncpa [#allocation3], 0  ;;  %v40_v1 = vld [vmem:[%s1822_s0 + $0x4] sm:$0xf]  ;;  %s1282_s19 = smov 127   ;;  %s1283_s12 = smov 126  }
   0x4   :  { %v41_v4 = vld [vmem:[%s1822_s0 + $0x8] sm:$0xf]  ;;  %v42_v7 = vld [vmem:[%s1822_s0 + $0xc] sm:$0xf]  ;;  %v43_v10 = vld [vmem:[%s1822_s0 + $0x10] sm:$0xf] }
   0x5   :  { %v44_v13 = vld [vmem:[%s1822_s0 + $0x14] sm:$0xf]  ;;  %v45_v16 = vld [vmem:[%s1822_s0 + $0x18] sm:$0xf]  ;;  %v46_v19 = vld [vmem:[%s1822_s0 + $0x1c] sm:$0xf] }
   0x6   :  { %v522_v22 = vld [vmem:[%s1822_s0] sm:$0xf]  ;;  %v523_v25 = vld [vmem:[%s1822_s0 + $0x4] sm:$0xf]  ;;  %v524_v28 = vld [vmem:[%s1822_s0 + $0x8] sm:$0xf] }
   0x7   :  { %v525_v33 = vld [vmem:[%s1822_s0 + $0xc] sm:$0xf]  ;;  %vm67_vm0 = vcmask 1039360   ;;  %vm76_vm1 = vcmask 1041408   ;;  %v1373_v39 = vld [vmem:[%s1823_s1 + $0x10] sm:$0xff]  ;;  %vm69_vm2 = vcmask 31744  }
   0x8   :  { %v526_v41 = vld [vmem:[%s1822_s0 + $0x10] sm:$0xf]  ;;  %v1385_v43 = vld [vmem:[%s1823_s1 + $0x18] sm:$0xff]  ;;  %v527_v44 = vld [vmem:[%s1822_s0 + $0x14] sm:$0xf]  ;;  %vm550_vm3 = vcmask 1031168  }
   0x9   :  { %v59_v2 = vld.sshfl [vmem:[#allocation1] sm:$0xff pattern:$0x73625140]  ;;  %v61_v3 = vld.sshfl [vmem:[#allocation1 + $0x8] sm:$0xff pattern:$0x73625140] }
   0xa   :  { %100 = vst [vmem:[#allocation1] ss:$4 sm:$0xff] %v40_v1  ;;  %63 = vrot.lane.b32.xlu2 %v59_v2, %s1282_s19  ;;  %v528_v51 = vld [vmem:[%s1822_s0 + $0x18] sm:$0xf]  ;;  %v529_v59 = vld [vmem:[%s1822_s0 + $0x1c] sm:$0xf] }
   0xb   :  { %vm1019_vm5 = vcmask 130112   ;;  %vm1023_vm6 = vcmask 195712   ;;  %vm1027_vm7 = vcmask 261312   ;;  %vm1078_vm8 = vcmask 1041409   ;;  %s1284_s28 = smov [#allocation2]  }
   0xc   :  { %vm1080_vm9 = vcmask 1042434   ;;  %vm1082_vm10 = vcmask 1043459   ;;  %vm1084_vm11 = vcmask 1044484   ;;  %vm1086_vm12 = vcmask 1045509   ;;  %s1147_s29 = sshll.u32 %s1284_s28, 4  ;;  %s1148_s29 = int_to_ptr.vmem [resolvable:$true] %s1147_s29 }
   0xd   :  { %vm1088_vm13 = vcmask 1046534   ;;  %vm1090_vm14 = vcmask 1047559   ;;  %vm1105_vm15 = vcmask 261120  }
  0x11   :  { %v101_v5 = vld.sshfl [vmem:[#allocation1] sm:$0xff pattern:$0x73625140]  ;;  %v103_v6 = vld.sshfl [vmem:[#allocation1 + $0x8] sm:$0xff pattern:$0x73625140] }
  0x12   :  { %133 = vst [vmem:[#allocation1] ss:$4 sm:$0xff] %v41_v4  ;;  %65 = vrot.lane.b32.xlu2 %v61_v3, %s1282_s19 }
  0x19   :  { %v134_v8 = vld.sshfl [vmem:[#allocation1] sm:$0xff pattern:$0x73625140]  ;;  %v136_v9 = vld.sshfl [vmem:[#allocation1 + $0x8] sm:$0xff pattern:$0x73625140] }
  0x1a   :  { %138 = vrot.lane.b32.xlu0 %v134_v8, %s1282_s19  ;;  %166 = vst [vmem:[#allocation1] ss:$4 sm:$0xff] %v42_v7  ;;  %v33_v8 = vld [vmem:[%s1822_s0 + $0x8] sm:$0x3] }
  0x21   :  { %v167_v11 = vld.sshfl [vmem:[#allocation1] sm:$0xff pattern:$0x73625140]  ;;  %v169_v12 = vld.sshfl [vmem:[#allocation1 + $0x8] sm:$0xff pattern:$0x73625140] }
  0x22   :  { %140 = vrot.lane.b32.xlu0 %v136_v9, %s1282_s19  ;;  %171 = vrot.lane.b32.xlu1 %v167_v11, %s1282_s19  ;;  %199 = vst [vmem:[#allocation1] ss:$4 sm:$0xff] %v43_v10  ;;  %v391_v10 = vsel %vm76_vm1, %v33_v8, 0 }
  0x29   :  { %v200_v14 = vld.sshfl [vmem:[#allocation1] sm:$0xff pattern:$0x73625140]  ;;  %v202_v15 = vld.sshfl [vmem:[#allocation1 + $0x8] sm:$0xff pattern:$0x73625140] }
  0x2a   :  { %173 = vrot.lane.b32.xlu1 %v169_v12, %s1282_s19  ;;  %105 = vrot.lane.b32.xlu0 %v101_v5, %s1282_s19  ;;  %232 = vst [vmem:[#allocation1] ss:$4 sm:$0xff] %v44_v13 }
  0x31   :  { %v233_v17 = vld.sshfl [vmem:[#allocation1] sm:$0xff pattern:$0x73625140]  ;;  %v235_v18 = vld.sshfl [vmem:[#allocation1 + $0x8] sm:$0xff pattern:$0x73625140] }
  0x32   :  { %107 = vrot.lane.b32.xlu1 %v103_v6, %s1282_s19  ;;  %204 = vrot.lane.b32.xlu0 %v200_v14, %s1282_s19  ;;  %265 = vst [vmem:[#allocation1] ss:$4 sm:$0xff] %v45_v16 }
  0x39   :  { %v268_v20 = vld.sshfl [vmem:[#allocation1 + $0x8] sm:$0xff pattern:$0x73625140]  ;;  %v266_v21 = vld.sshfl [vmem:[#allocation1] sm:$0xff pattern:$0x73625140] }
  0x3a   :  { %272 = vrot.lane.b32.xlu0 %v268_v20, %s1282_s19  ;;  %298 = vst [vmem:[#allocation1] ss:$4 sm:$0xff] %v46_v19  ;;  %270 = vrot.lane.b32.xlu2 %v266_v21, %s1282_s19  ;;  %v32_v19 = vld [vmem:[%s1822_s0 + $0x4] sm:$0x3] }
  0x3b   :  { %v369_v21 = vsel %vm76_vm1, %v32_v19, 0 }
  0x41   :  { %v299_v23 = vld.sshfl [vmem:[#allocation1] sm:$0xff pattern:$0x73625140]  ;;  %v301_v24 = vld.sshfl [vmem:[#allocation1 + $0x8] sm:$0xff pattern:$0x73625140] }
  0x42   :  { %303 = vrot.lane.b32.xlu1 %v299_v23, %s1282_s19  ;;  %239 = vrot.lane.b32.xlu0 %v235_v18, %s1282_s19  ;;  %541 = vst [vmem:[#allocation1] ss:$4 sm:$0xff] %v522_v22  ;;  %v34_v18 = vld [vmem:[%s1822_s0 + $0xc] sm:$0x3] }
  0x43   :  { %305 = vrot.lane.b32.xlu2 %v301_v24, %s1282_s19  ;;  %v413_v20 = vsel %vm76_vm1, %v34_v18, 0 }
  0x49   :  { %v542_v26 = vld.sshfl [vmem:[#allocation1] sm:$0xff pattern:$0x73625140]  ;;  %v544_v27 = vld.sshfl [vmem:[#allocation1 + $0x8] sm:$0xff pattern:$0x73625140] }
  0x4a   :  { %206 = vrot.lane.b32.xlu1 %v202_v15, %s1282_s19  ;;  %581 = vst [vmem:[#allocation1] ss:$4 sm:$0xff] %v523_v25 }
  0x4b   :  { %237 = vrot.lane.b32.xlu2 %v233_v17, %s1282_s19  ;;  %v31_v17 = vld [vmem:[%s1822_s0] sm:$0x3] }
  0x4c   :  { %v347_v24 = vsel %vm76_vm1, %v31_v17, 0 }
  0x51   :  { %v582_v29 = vld.sshfl [vmem:[#allocation1] sm:$0xff pattern:$0x73625140]  ;;  %v584_v30 = vld.sshfl [vmem:[#allocation1 + $0x8] sm:$0xff pattern:$0x73625140] }
  0x52   :  { %614 = vst [vmem:[#allocation1] ss:$4 sm:$0xff] %v524_v28  ;;  %v1240_v28 = vld [vmem:[%s1823_s1] sm:$0xff] }
  0x53   :  { %546 = vrot.lane.b32.xlu2 %v542_v26, %s1283_s12  ;;  %v37_v26 = vld [vmem:[%s1822_s0 + $0x18] sm:$0x3] }
  0x59   :  { %v615_v31 = vld.sshfl [vmem:[#allocation1] sm:$0xff pattern:$0x73625140]  ;;  %v617_v32 = vld.sshfl [vmem:[#allocation1 + $0x8] sm:$0xff pattern:$0x73625140] }
  0x5a   :  { %619 = vrot.lane.b32.xlu1 %v615_v31, %s1283_s12  ;;  %647 = vst [vmem:[#allocation1] ss:$4 sm:$0xff] %v525_v33  ;;  %v36_v31 = vld [vmem:[%s1822_s0 + $0x14] sm:$0x3] }
  0x5b   :  { %621 = vrot.lane.b32.xlu2 %v617_v32, %s1283_s12 }
  0x61   :  { %v648_v35 = vld.sshfl [vmem:[#allocation1] sm:$0xff pattern:$0x73625140]  ;;  %v650_v40 = vld.sshfl [vmem:[#allocation1 + $0x8] sm:$0xff pattern:$0x73625140] }
  0x62   :  { %652 = vrot.lane.b32.xlu0 %v648_v35, %s1283_s12  ;;  %654 = vrot.lane.b32.xlu1 %v650_v40, %s1283_s12  ;;  %680 = vst [vmem:[#allocation1] ss:$4 sm:$0xff] %v526_v41 }
  0x63   :  { %588 = vrot.lane.b32.xlu2 %v584_v30, %s1283_s12  ;;  %v38_v30 = vld [vmem:[%s1822_s0 + $0x1c] sm:$0x3] }
  0x64   :  { %v64_v34 = vpop.permute.xlu2 %63  ;;  %v501_v33 = vsel %vm76_vm1, %v38_v30, 0 }
  0x69   :  { %v681_v45 = vld.sshfl [vmem:[#allocation1] sm:$0xff pattern:$0x73625140]  ;;  %v1392_v46 = vld.sshfl [vmem:[#allocation1 + $0x8] sm:$0xff pattern:$0x73625140] }
  0x6a   :  { %548 = vrot.lane.b32.xlu0 %v544_v27, %s1283_s12  ;;  %586 = vrot.lane.b32.xlu1 %v582_v29, %s1283_s12  ;;  %713 = vst [vmem:[#allocation1] ss:$4 sm:$0xff] %v527_v44  ;;  %v479_v27 = vsel %vm76_vm1, %v37_v26, 0  ;;  %v35_v29 = vld [vmem:[%s1822_s0 + $0x10] sm:$0x3] }
  0x6b   :  { %v435_v32 = vsel %vm76_vm1, %v35_v29, 0 }
  0x6c   :  { %v66_v36 = vpop.permute.xlu2 %65 }
  0x6d   :  { %v68_v37 = vsel %vm67_vm0, %v64_v34, %v66_v36  ;;  %v457_v34 = vsel %vm76_vm1, %v36_v31, 0  ;;  %v1241_v36 = vld [vmem:[%s1823_s1 + $0x8] sm:$0xff] }
  0x6e   :  { %v78_v38 = vsel %vm76_vm1, %v68_v37, 0 }
  0x6f   :  { %87 = vmatpush.bf16.msra.mxu0 %v78_v38 }
  0x71   :  { %v714_v52 = vld.sshfl [vmem:[#allocation1] sm:$0xff pattern:$0x73625140]  ;;  %v716_v53 = vld.sshfl [vmem:[#allocation1 + $0x8] sm:$0xff pattern:$0x73625140] }
  0x72   :  { %1166 = vmatmul.msk.bf16.vlgmr.msra.gmra.mxu0 %vm69_vm2, %v1373_v39  ;;  %685 = vrot.lane.b32.xlu1 %v681_v45, %s1283_s12  ;;  %746 = vst [vmem:[#allocation1] ss:$4 sm:$0xff] %v528_v51 }
  0x79   :  { %v747_v60 = vld.sshfl [vmem:[#allocation1] sm:$0xff pattern:$0x73625140]  ;;  %v749_v61 = vld.sshfl [vmem:[#allocation1 + $0x8] sm:$0xff pattern:$0x73625140] }
  0x7a   :  { %751 = vrot.lane.b32.xlu0 %v747_v60, %s1283_s12  ;;  %779 = vst [vmem:[#allocation1] ss:$4 sm:$0xff] %v529_v59  ;;  %753 = vrot.lane.b32.xlu1 %v749_v61, %s1283_s12 }
  0x81   :  { %v782_v3 = vld.sshfl [vmem:[#allocation1 + $0x8] sm:$0xff pattern:$0x73625140]  ;;  %v780_v9 = vld.sshfl [vmem:[#allocation1] sm:$0xff pattern:$0x73625140] }
  0x82   :  { %1167 = vmatmul.msk.bf16.gmra.mxu0 %vm69_vm2, %v1385_v43  ;;  %786 = vrot.lane.b32.xlu0 %v782_v3, %s1283_s12 }
  0x83   :  { %720 = vrot.lane.b32.xlu1 %v716_v53, %s1283_s12  ;;  %784 = vrot.lane.b32.xlu2 %v780_v9, %s1283_s12 }
  0x8a   :  { %718 = vrot.lane.b32.xlu0 %v714_v52, %s1283_s12 }
  0x8b   :  { %687 = vrot.lane.b32.xlu2 %v1392_v46, %s1283_s12 }
  0x8c   :  { %v139_v42 = vpop.permute.xlu0 %138 }
  0x94   :  { %v141_v47 = vpop.permute.xlu0 %140  ;;  %v172_v48 = vpop.permute.xlu1 %171 }
  0x95   :  { %v142_v49 = vsel %vm67_vm0, %v139_v42, %v141_v47  ;;  %v271_v58 = vpop.permute.xlu2 %270 }
  0x96   :  { %v144_v50 = vsel %vm76_vm1, %v142_v49, 0 }
  0x97   :  { %153 = vmatpush.bf16.msra.mxu2 %v144_v50 }
  0x9a   :  { %1170 = vmatmul.msk.bf16.vlgmr.msra.gmra.mxu2 %vm69_vm2, %v1373_v39 }
  0x9c   :  { %v174_v54 = vpop.permute.xlu1 %173  ;;  %v106_v55 = vpop.permute.xlu0 %105 }
  0x9d   :  { %v175_v56 = vsel %vm67_vm0, %v172_v48, %v174_v54  ;;  %v306_v2 = vpop.permute.xlu2 %305 }
  0x9e   :  { %v177_v57 = vsel %vm76_vm1, %v175_v56, 0  ;;  %v1244_v56 = vld [vmem:[%s1823_s1 + $0x20] sm:$0xff] }
  0x9f   :  { %186 = vmatpush.bf16.msra.mxu3 %v177_v57 }
  0xa2   :  { %1172 = vmatmul.msk.bf16.vlgmr.msra.gmra.mxu3 %vm69_vm2, %v1373_v39 }
  0xa4   :  { %v108_v62 = vpop.permute.xlu1 %107  ;;  %v205_v63 = vpop.permute.xlu0 %204 }
  0xa5   :  { %v109_v0 = vsel %vm67_vm0, %v106_v55, %v108_v62  ;;  %v238_v7 = vpop.permute.xlu2 %237 }
  0xa6   :  { %v111_v1 = vsel %vm76_vm1, %v109_v0, 0 }
  0xa7   :  { %120 = vmatpush.bf16.msra.mxu1 %v111_v1 }
  0xaa   :  { %1168 = vmatmul.msk.bf16.vlgmr.msra.gmra.mxu1 %vm69_vm2, %v1373_v39  ;;  %1171 = vmatmul.msk.bf16.gmra.mxu2 %vm69_vm2, %v1385_v43 }
  0xac   :  { %v273_v4 = vpop.permute.xlu0 %272 }
  0xad   :  { %v274_v5 = vsel %vm67_vm0, %v271_v58, %v273_v4  ;;  %v547_v35 = vpop.permute.xlu2 %546 }
  0xae   :  { %v276_v6 = vsel %vm76_vm1, %v274_v5, 0 }
  0xaf   :  { %285 = vmatpush.bf16.msrb.mxu2 %v276_v6 }
  0xb2   :  { %1173 = vmatmul.msk.bf16.gmra.mxu3 %vm69_vm2, %v1385_v43 }
  0xb3   :  { %400 = vmatpush.bf16.msra.mxu2 %v391_v10 }
  0xb4   :  { %v304_v11 = vpop.permute.xlu1 %303  ;;  %v240_v12 = vpop.permute.xlu0 %239 }
  0xb5   :  { %v307_v13 = vsel %vm67_vm0, %v304_v11, %v306_v2  ;;  %v241_v14 = vsel %vm67_vm0, %v238_v7, %v240_v12  ;;  %v1245_v7 = vld [vmem:[%s1823_s1 + $0x28] sm:$0xff] }
  0xb6   :  { %v309_v15 = vsel %vm76_vm1, %v307_v13, 0  ;;  %v243_v16 = vsel %vm76_vm1, %v241_v14, 0 }
  0xb7   :  { %318 = vmatpush.bf16.msrb.mxu3 %v309_v15  ;;  %252 = vmatpush.bf16.msrb.mxu1 %v243_v16 }
  0xba   :  { %1169 = vmatmul.msk.bf16.gmra.mxu1 %vm69_vm2, %v1385_v43  ;;  %1178 = vmatmul.msk.bf16.vlgmr.msrb.gmra.mxu2 %vm69_vm2, %v1373_v39 }
  0xbb   :  { %422 = vmatpush.bf16.msra.mxu3 %v413_v20  ;;  %378 = vmatpush.bf16.msra.mxu1 %v369_v21 }
  0xbc   :  { %v207_v22 = vpop.permute.xlu1 %206  ;;  %488 = vmatpush.bf16.msrb.mxu2 %v479_v27 }
  0xbd   :  { %v208_v23 = vsel %vm67_vm0, %v205_v63, %v207_v22 }
  0xbe   :  { %v210_v25 = vsel %vm76_vm1, %v208_v23, 0 }
  0xbf   :  { %219 = vmatpush.bf16.msrb.mxu0 %v210_v25 }
  0xc2   :  { %1174 = vmatmul.msk.bf16.vlgmr.msrb.gmra.mxu0 %vm69_vm2, %v1373_v39  ;;  %1180 = vmatmul.msk.bf16.vlgmr.msrb.gmra.mxu3 %vm69_vm2, %v1373_v39 }
  0xc3   :  { %356 = vmatpush.bf16.msra.mxu0 %v347_v24  ;;  %510 = vmatpush.bf16.msrb.mxu3 %v501_v33 }
  0xc7   :  { %444 = vmatpush.bf16.msrb.mxu0 %v435_v32 }
  0xca   :  { %1176 = vmatmul.msk.bf16.vlgmr.msrb.gmra.mxu1 %vm69_vm2, %v1373_v39  ;;  %1179 = vmatmul.msk.bf16.gmra.mxu2 %vm69_vm2, %v1385_v43  ;;  %v622_v39 = vpop.permute.xlu2 %621 }
  0xcb   :  { %466 = vmatpush.bf16.msrb.mxu1 %v457_v34 }
  0xcc   :  { %v620_v38 = vpop.permute.xlu1 %619 }
  0xcd   :  { %v623_v40 = vsel %vm550_vm3, %v620_v38, %v622_v39 }
  0xce   :  { %v625_v41 = vsel %vm76_vm1, %v623_v40, 0 }
  0xd2   :  { %1175 = vmatmul.msk.bf16.gmra.mxu0 %vm69_vm2, %v1385_v43  ;;  %1181 = vmatmul.msk.bf16.gmra.mxu3 %vm69_vm2, %v1385_v43  ;;  %v589_v48 = vpop.permute.xlu2 %588 }
  0xd4   :  { %v653_v37 = vpop.permute.xlu0 %652  ;;  %v655_v45 = vpop.permute.xlu1 %654 }
  0xd5   :  { %v656_v46 = vsel %vm550_vm3, %v653_v37, %v655_v45 }
  0xd6   :  { %v658_v47 = vsel %vm76_vm1, %v656_v46, 0 }
  0xda   :  { %1177 = vmatmul.msk.bf16.gmra.mxu1 %vm69_vm2, %v1385_v43  ;;  %1194 = vmatmul.msk.bf16.vlgmr.msra.gmra.mxu2 %vm69_vm2, %v1240_v28 }
  0xdb   :  { %634 = vmatpush.bf16.msra.mxu2 %v625_v41 }
  0xdc   :  { %v549_v42 = vpop.permute.xlu0 %548  ;;  %v587_v49 = vpop.permute.xlu1 %586 }
  0xdd   :  { %v551_v43 = vsel %vm550_vm3, %v547_v35, %v549_v42  ;;  %v590_v50 = vsel %vm550_vm3, %v587_v49, %v589_v48  ;;  %v785_v53 = vpop.permute.xlu2 %784 }
  0xde   :  { %v559_v44 = vsel %vm76_vm1, %v551_v43, 0  ;;  %v592_v51 = vsel %vm76_vm1, %v590_v50, 0 }
  0xe2   :  { %1190 = vmatmul.msk.bf16.vlgmr.msra.gmra.mxu0 %vm69_vm2, %v1240_v28  ;;  %1196 = vmatmul.msk.bf16.vlgmr.msra.gmra.mxu3 %vm69_vm2, %v1240_v28 }
  0xe3   :  { %568 = vmatpush.bf16.msra.mxu0 %v559_v44  ;;  %667 = vmatpush.bf16.msra.mxu3 %v658_v47 }
  0xe4   :  { %v686_v52 = vpop.permute.xlu1 %685 }
  0xe5   :  { %v688_v60 = vpop.permute.xlu2 %687 }
  0xe6   :  { %v689_v61 = vsel %vm550_vm3, %v686_v52, %v688_v60 }
  0xe7   :  { %v691_v62 = vsel %vm76_vm1, %v689_v61, 0 }
  0xea   :  { %1192 = vmatmul.msk.bf16.vlgmr.msra.gmra.mxu1 %vm69_vm2, %v1240_v28  ;;  %1195 = vmatmul.msk.bf16.gmra.mxu2 %vm69_vm2, %v1241_v36 }
  0xeb   :  { %601 = vmatpush.bf16.msra.mxu1 %v592_v51 }
  0xec   :  { %v752_v54 = vpop.permute.xlu0 %751  ;;  %v754_v55 = vpop.permute.xlu1 %753 }
  0xed   :  { %v755_v58 = vsel %vm550_vm3, %v752_v54, %v754_v55 }
  0xee   :  { %v757_v59 = vsel %vm76_vm1, %v755_v58, 0 }
  0xef   :  { %v1515_v57 = vpop.f32.mrf.mxu0 }
  0xf2   :  { %1191 = vmatmul.msk.bf16.gmra.mxu0 %vm69_vm2, %v1241_v36  ;;  %1197 = vmatmul.msk.bf16.gmra.mxu3 %vm69_vm2, %v1241_v36 }
  0xf4   :  { %v787_v0 = vpop.permute.xlu0 %786 }
  0xf5   :  { %v788_v1 = vsel %vm550_vm3, %v785_v53, %v787_v0  ;;  %v721_v4 = vpop.permute.xlu1 %720 }
  0xf6   :  { %v790_v2 = vsel %vm76_vm1, %v788_v1, 0 }
  0xf7   :  { %v1527_v3 = vpop.f32.mrf.mxu0 }
  0xfa   :  { %1193 = vmatmul.msk.bf16.gmra.mxu1 %vm69_vm2, %v1241_v36  ;;  %1202 = vmatmul.msk.bf16.vlgmr.msrb.gmra.mxu2 %vm69_vm2, %v1240_v28 }
  0xfb   :  { %766 = vmatpush.bf16.msrb.mxu2 %v757_v59 }
  0xfc   :  { %v719_v8 = vpop.permute.xlu0 %718 }
  0xfd   :  { %v722_v10 = vsel %vm550_vm3, %v719_v8, %v721_v4 }
  0xfe   :  { %v724_v11 = vsel %vm76_vm1, %v722_v10, 0 }
  0xff   :  { %v1542_v12 = vpop.f32.mrf.mxu0 }
 0x102   :  { %1198 = vmatmul.msk.bf16.vlgmr.msrb.gmra.mxu0 %vm69_vm2, %v1240_v28  ;;  %1204 = vmatmul.msk.bf16.vlgmr.msrb.gmra.mxu3 %vm69_vm2, %v1240_v28 }
 0x103   :  { %700 = vmatpush.bf16.msrb.mxu0 %v691_v62  ;;  %799 = vmatpush.bf16.msrb.mxu3 %v790_v2 }
 0x107   :  { %v1548_v16 = vpop.f32.mrf.mxu0 }
 0x10a   :  { %1200 = vmatmul.msk.bf16.vlgmr.msrb.gmra.mxu1 %vm69_vm2, %v1240_v28  ;;  %1203 = vmatmul.msk.bf16.gmra.mxu2 %vm69_vm2, %v1241_v36 }
 0x10b   :  { %733 = vmatpush.bf16.msrb.mxu1 %v724_v11 }
 0x112   :  { %1199 = vmatmul.msk.bf16.gmra.mxu0 %vm69_vm2, %v1241_v36  ;;  %1205 = vmatmul.msk.bf16.gmra.mxu3 %vm69_vm2, %v1241_v36 }
 0x11a   :  { %1201 = vmatmul.msk.bf16.gmra.mxu1 %vm69_vm2, %v1241_v36  ;;  %1218 = vmatmul.msk.bf16.vlgmr.msra.gmra.mxu2 %vm69_vm2, %v1244_v56 }
 0x11d   :  { %v1523_v63 = vpop.f32.mrf.mxu2 }
 0x122   :  { %1214 = vmatmul.msk.bf16.vlgmr.msra.gmra.mxu0 %vm69_vm2, %v1244_v56  ;;  %1220 = vmatmul.msk.bf16.vlgmr.msra.gmra.mxu3 %vm69_vm2, %v1244_v56 }
 0x125   :  { %v157_v5 = vpop.f32.mrf.mxu2  ;;  %v1531_v6 = vpop.f32.mrf.mxu3 }
 0x127   :  { %v1536_v9 = vpop.f32.mrf.mxu1 }
 0x12a   :  { %1216 = vmatmul.msk.bf16.vlgmr.msra.gmra.mxu1 %vm69_vm2, %v1244_v56  ;;  %1219 = vmatmul.msk.bf16.gmra.mxu2 %vm69_vm2, %v1245_v7 }
 0x12d   :  { %v160_v13 = vpop.f32.mrf.mxu2  ;;  %v190_v14 = vpop.f32.mrf.mxu3 }
 0x12f   :  { %v1544_v15 = vpop.f32.mrf.mxu1 }
 0x132   :  { %1215 = vmatmul.msk.bf16.gmra.mxu0 %vm69_vm2, %v1245_v7  ;;  %1221 = vmatmul.msk.bf16.gmra.mxu3 %vm69_vm2, %v1245_v7 }
 0x135   :  { %v162_v17 = vpop.f32.mrf.mxu2  ;;  %v193_v18 = vpop.f32.mrf.mxu3 }
 0x137   :  { %v1550_v19 = vpop.f32.mrf.mxu1 }
 0x13a   :  { %1217 = vmatmul.msk.bf16.gmra.mxu1 %vm69_vm2, %v1245_v7  ;;  %1226 = vmatmul.msk.bf16.vlgmr.msrb.gmra.mxu2 %vm69_vm2, %v1244_v56 }
 0x13d   :  { %v1554_v20 = vpop.f32.mrf.mxu3  ;;  %v287_v21 = vpop.f32.mrf.mxu2 }
 0x13f   :  { %v1556_v22 = vpop.f32.mrf.mxu1  ;;  %v221_v23 = vpop.f32.mrf.mxu0 }
 0x142   :  { %1222 = vmatmul.msk.bf16.vlgmr.msrb.gmra.mxu0 %vm69_vm2, %v1244_v56  ;;  %1228 = vmatmul.msk.bf16.vlgmr.msrb.gmra.mxu3 %vm69_vm2, %v1244_v56 }
 0x145   :  { %v289_v24 = vpop.f32.mrf.mxu2  ;;  %v320_v25 = vpop.f32.mrf.mxu3 }
 0x147   :  { %v1560_v26 = vpop.f32.mrf.mxu0  ;;  %v254_v27 = vpop.f32.mrf.mxu1 }
 0x14a   :  { %1224 = vmatmul.msk.bf16.vlgmr.msrb.gmra.mxu1 %vm69_vm2, %v1244_v56  ;;  %1227 = vmatmul.msk.bf16.gmra.mxu2 %vm69_vm2, %v1245_v7 }
 0x14d   :  { %v292_v28 = vpop.f32.mrf.mxu2  ;;  %v322_v29 = vpop.f32.mrf.mxu3 }
 0x14f   :  { %v1564_v30 = vpop.f32.mrf.mxu0  ;;  %v256_v31 = vpop.f32.mrf.mxu1 }
 0x152   :  { %1223 = vmatmul.msk.bf16.gmra.mxu0 %vm69_vm2, %v1245_v7  ;;  %1229 = vmatmul.msk.bf16.gmra.mxu3 %vm69_vm2, %v1245_v7 }
 0x155   :  { %v294_v32 = vpop.f32.mrf.mxu2  ;;  %v1568_v33 = vpop.f32.mrf.mxu3 }
 0x157   :  { %v228_v34 = vpop.f32.mrf.mxu0  ;;  %v259_v35 = vpop.f32.mrf.mxu1 }
 0x15a   :  { %1225 = vmatmul.msk.bf16.gmra.mxu1 %vm69_vm2, %v1245_v7 }
 0x15d   :  { %v1571_v36 = vpop.f32.mrf.mxu3  ;;  %v1573_v37 = vpop.f32.mrf.mxu2 }
 0x15f   :  { %v261_v38 = vpop.f32.mrf.mxu1  ;;  %v358_v39 = vpop.f32.mrf.mxu0 }
 0x165   :  { %v404_v40 = vpop.f32.mrf.mxu2  ;;  %v1575_v41 = vpop.f32.mrf.mxu3 }
 0x166   :  { %v1577_v42 = vadd.f32 %v404_v40, %v157_v5 }
 0x167   :  { %v360_v43 = vpop.f32.mrf.mxu0  ;;  %v380_v44 = vpop.f32.mrf.mxu1 }
 0x16d   :  { %v407_v45 = vpop.f32.mrf.mxu2  ;;  %v426_v46 = vpop.f32.mrf.mxu3 }
 0x16e   :  { %v1579_v47 = vadd.f32 %v407_v45, %v160_v13  ;;  %v1581_v48 = vadd.f32 %v426_v46, %v190_v14 }
 0x16f   :  { %v1583_v49 = vpop.f32.mrf.mxu0  ;;  %v382_v50 = vpop.f32.mrf.mxu1 }
 0x175   :  { %v409_v51 = vpop.f32.mrf.mxu2  ;;  %v429_v52 = vpop.f32.mrf.mxu3 }
 0x176   :  { %v1585_v53 = vadd.f32 %v409_v51, %v162_v17  ;;  %v1587_v54 = vadd.f32 %v429_v52, %v193_v18  ;;  %v843_v51 = vlaneseq }
 0x177   :  { %v1589_v55 = vpop.f32.mrf.mxu0  ;;  %v1591_v56 = vpop.f32.mrf.mxu1 }
 0x178   :  { %v1623_v52 = vand.u32 127, %v843_v51 }
 0x17a   :  { %vm845_vm4 = vcmp.lt.s32.totalorder %v1623_v52, 14 }
 0x17d   :  { %v1593_v58 = vpop.f32.mrf.mxu3  ;;  %v490_v59 = vpop.f32.mrf.mxu2 }
 0x17e   :  { %v1595_v60 = vadd.f32 %v490_v59, %v287_v21 }
 0x17f   :  { %v1597_v61 = vpop.f32.mrf.mxu1  ;;  %v446_v62 = vpop.f32.mrf.mxu0 }
 0x180   :  { %v1599_v0 = vadd.f32 %v446_v62, %v221_v23 }
 0x185   :  { %v492_v1 = vpop.f32.mrf.mxu2  ;;  %v512_v2 = vpop.f32.mrf.mxu3 }
 0x186   :  { %v1601_v4 = vadd.f32 %v492_v1, %v289_v24  ;;  %v1603_v5 = vadd.f32 %v512_v2, %v320_v25  ;;  %v361_v1 = vadd.f32 %v360_v43, %v1527_v3  ;;  %v381_v2 = vadd.f32 %v380_v44, %v1536_v9 }
 0x187   :  { %v1605_v7 = vpop.f32.mrf.mxu0  ;;  %v468_v8 = vpop.f32.mrf.mxu1  ;;  %v383_v3 = vadd.f32 %v382_v50, %v1544_v15  ;;  %v386_v15 = vadd.f32 %v1591_v56, %v1550_v19 }
 0x188   :  { %v1607_v10 = vadd.f32 %v468_v8, %v254_v27 }
 0x18d   :  { %v495_v11 = vpop.f32.mrf.mxu2  ;;  %v514_v13 = vpop.f32.mrf.mxu3 }
 0x18e   :  { %v1609_v14 = vadd.f32 %v495_v11, %v292_v28  ;;  %v1611_v17 = vadd.f32 %v514_v13, %v322_v29  ;;  %v359_v28 = vadd.f32 %v358_v39, %v1515_v57 }
 0x18f   :  { %v1613_v18 = vpop.f32.mrf.mxu0  ;;  %v470_v21 = vpop.f32.mrf.mxu1 }
 0x190   :  { %v1615_v23 = vadd.f32 %v470_v21, %v256_v31  ;;  %v403_v21 = vadd.f32 %v1573_v37, %v1523_v63  ;;  %v364_v63 = vadd.f32 %v1583_v49, %v1542_v12  ;;  %v366_v37 = vadd.f32 %v1589_v55, %v1548_v16 }
 0x191   :  { %v388_v16 = vadd.f32 %v1597_v61, %v1556_v22  ;;  %v449_v22 = vadd.f32 %v1605_v7, %v1560_v26 }
 0x195   :  { %v497_v24 = vpop.f32.mrf.mxu2 }
 0x196   :  { %v1617_v40 = vadd.f32 %v497_v24, %v294_v32  ;;  %v1629_v32 = vpop.f32.mrf.mxu3 }
 0x197   :  { %v453_v25 = vpop.f32.mrf.mxu0  ;;  %v473_v45 = vpop.f32.mrf.mxu1 }
 0x198   :  { %v1619_v46 = vadd.f32 %v453_v25, %v228_v34  ;;  %v1621_v27 = vadd.f32 %v473_v45, %v259_v35 }
 0x19d   :  { %v636_v35 = vpop.f32.mrf.mxu2 }
 0x19e   :  { %v1641_v24 = vpop.f32.mrf.mxu3  ;;  %v819_v9 = vadd.f32 %v636_v35, %v403_v21 }
 0x19f   :  { %v475_v29 = vpop.f32.mrf.mxu1  ;;  %v570_v59 = vpop.f32.mrf.mxu0 }
 0x1a0   :  { %v1626_v62 = vadd.f32 %v475_v29, %v261_v38  ;;  %v811_v31 = vadd.f32 %v570_v59, %v359_v28  ;;  %v856_v51 = vsel %vm845_vm4, %v819_v9, -inf }
 0x1a2   :  { %v848_v34 = vsel %vm845_vm4, %v811_v31, -inf }
 0x1a3   :  { %880 = vmax.xlane.f32.xlu2 %v848_v34 }
 0x1a5   :  { %v638_v43 = vpop.f32.mrf.mxu2 }
 0x1a6   :  { %v669_v50 = vpop.f32.mrf.mxu3  ;;  %v820_v19 = vadd.f32 %v638_v43, %v1577_v42 }
 0x1a7   :  { %v572_v8 = vpop.f32.mrf.mxu0  ;;  %v603_v57 = vpop.f32.mrf.mxu1 }
 0x1a8   :  { %v812_v39 = vadd.f32 %v572_v8, %v361_v1  ;;  %v815_v11 = vadd.f32 %v603_v57, %v381_v2 }
 0x1aa   :  { %v852_v38 = vsel %vm845_vm4, %v815_v11, -inf  ;;  %v849_v13 = vsel %vm845_vm4, %v812_v39, -inf  ;;  %v857_v39 = vsel %vm845_vm4, %v820_v19, -inf }
 0x1ab   :  { %888 = vmax.xlane.f32.xlu1 %v852_v38  ;;  %882 = vmax.xlane.f32.xlu0 %v849_v13  ;;  %v425_v13 = vadd.f32 %v1575_v41, %v1531_v6  ;;  %v452_v41 = vadd.f32 %v1613_v18, %v1564_v30 }
 0x1ad   :  { %v641_v1 = vpop.f32.mrf.mxu2  ;;  %v823_v42 = vadd.f32 %v669_v50, %v425_v13 }
 0x1ae   :  { %v671_v56 = vpop.f32.mrf.mxu3  ;;  %v821_v7 = vadd.f32 %v641_v1, %v1579_v47 }
 0x1af   :  { %v575_v44 = vpop.f32.mrf.mxu0  ;;  %v605_v25 = vpop.f32.mrf.mxu1 }
 0x1b0   :  { %v816_v45 = vadd.f32 %v605_v25, %v383_v3  ;;  %v813_v29 = vadd.f32 %v575_v44, %v364_v63  ;;  %v860_v44 = vsel %vm845_vm4, %v823_v42, -inf  ;;  %v518_v42 = vadd.f32 %v1629_v32, %v1568_v33 }
 0x1b1   :  { %v520_v33 = vadd.f32 %v1641_v24, %v1571_v36  ;;  %v1743_v24 = vadd.s32 4294967280, %v1623_v52 }
 0x1b2   :  { %v853_v28 = vsel %vm845_vm4, %v816_v45, -inf  ;;  %v850_v12 = vsel %vm845_vm4, %v813_v29, -inf }
 0x1b3   :  { %896 = vmax.xlane.f32.xlu0 %v856_v51  ;;  %890 = vmax.xlane.f32.xlu2 %v853_v28 }
 0x1b5   :  { %v643_v38 = vpop.f32.mrf.mxu2 }
 0x1b6   :  { %v674_v43 = vpop.f32.mrf.mxu3  ;;  %v822_v30 = vadd.f32 %v643_v38, %v1585_v53  ;;  %v432_v53 = vadd.f32 %v1593_v58, %v1554_v20 }
 0x1b7   :  { %v577_v59 = vpop.f32.mrf.mxu0  ;;  %v608_v31 = vpop.f32.mrf.mxu1 }
 0x1b8   :  { %v814_v34 = vadd.f32 %v577_v59, %v366_v37  ;;  %v817_v35 = vadd.f32 %v608_v31, %v386_v15  ;;  %v858_v15 = vsel %vm845_vm4, %v821_v7, -inf  ;;  %v859_v31 = vsel %vm845_vm4, %v822_v30, -inf }
 0x1ba   :  { %v854_v2 = vsel %vm845_vm4, %v817_v35, -inf  ;;  %v851_v8 = vsel %vm845_vm4, %v814_v34, -inf }
 0x1bb   :  { %892 = vmax.xlane.f32.xlu1 %v854_v2  ;;  %886 = vmax.xlane.f32.xlu0 %v851_v8 }
 0x1bc   :  { %884 = vmax.xlane.f32.xlu2 %v850_v12 }
 0x1bd   :  { %v768_v26 = vpop.f32.mrf.mxu2 }
 0x1be   :  { %v676_v50 = vpop.f32.mrf.mxu3 }
 0x1bf   :  { %v610_v49 = vpop.f32.mrf.mxu1  ;;  %v702_v55 = vpop.f32.mrf.mxu0 }
 0x1c0   :  { %v818_v57 = vadd.f32 %v610_v49, %v388_v16  ;;  %v827_v61 = vadd.f32 %v702_v55, %v1599_v0 }
 0x1c2   :  { %v855_v11 = vsel %vm845_vm4, %v818_v57, -inf  ;;  %v864_v6 = vsel %vm845_vm4, %v827_v61, -inf }
 0x1c3   :  { %898 = vmax.xlane.f32.xlu1 %v857_v39 }
 0x1c4   :  { %894 = vmax.xlane.f32.xlu2 %v855_v11 }
 0x1c5   :  { %v770_v18 = vpop.f32.mrf.mxu2 }
 0x1c6   :  { %v801_v1 = vpop.f32.mrf.mxu3 }
 0x1c7   :  { %v704_v21 = vpop.f32.mrf.mxu0  ;;  %v735_v3 = vpop.f32.mrf.mxu1 }
 0x1c8   :  { %v828_v9 = vadd.f32 %v704_v21, %v449_v22  ;;  %v831_v0 = vadd.f32 %v735_v3, %v1607_v10  ;;  %v824_v10 = vadd.f32 %v671_v56, %v1581_v48  ;;  %v825_v48 = vadd.f32 %v674_v43, %v1587_v54 }
 0x1c9   :  { %v835_v54 = vadd.f32 %v768_v26, %v1595_v60 }
 0x1ca   :  { %v865_v25 = vsel %vm845_vm4, %v828_v9, -inf  ;;  %v868_v37 = vsel %vm845_vm4, %v831_v0, -inf  ;;  %v861_v34 = vsel %vm845_vm4, %v824_v10, -inf  ;;  %v862_v16 = vsel %vm845_vm4, %v825_v48, -inf }
 0x1cb   :  { %904 = vmax.xlane.f32.xlu1 %v860_v44  ;;  %914 = vmax.xlane.f32.xlu0 %v865_v25  ;;  %v872_v55 = vsel %vm845_vm4, %v835_v54, -inf  ;;  %v1740_v0 = vadd.s32 4294967288, %v1623_v52 }
 0x1cc   :  { %912 = vmax.xlane.f32.xlu2 %v864_v6 }
 0x1cd   :  { %v773_v8 = vpop.f32.mrf.mxu2 }
 0x1ce   :  { %v803_v49 = vpop.f32.mrf.mxu3  ;;  %v837_v60 = vadd.f32 %v773_v8, %v1609_v14 }
 0x1cf   :  { %v707_v45 = vpop.f32.mrf.mxu0  ;;  %v737_v51 = vpop.f32.mrf.mxu1  ;;  %v840_v14 = vadd.f32 %v803_v49, %v1611_v17 }
 0x1d0   :  { %v829_v28 = vadd.f32 %v707_v45, %v452_v41  ;;  %v832_v47 = vadd.f32 %v737_v51, %v1615_v23  ;;  %v826_v23 = vadd.f32 %v676_v50, %v432_v53  ;;  %v874_v13 = vsel %vm845_vm4, %v837_v60, -inf }
 0x1d1   :  { %v877_v21 = vsel %vm845_vm4, %v840_v14, -inf }
 0x1d2   :  { %v866_v63 = vsel %vm845_vm4, %v829_v28, -inf  ;;  %v869_v59 = vsel %vm845_vm4, %v832_v47, -inf  ;;  %v863_v12 = vsel %vm845_vm4, %v826_v23, -inf }
 0x1d3   :  { %916 = vmax.xlane.f32.xlu1 %v866_v63  ;;  %920 = vmax.xlane.f32.xlu0 %v868_v37  ;;  %v1746_v63 = vadd.s32 4294967272, %v1623_v52 }
 0x1d4   :  { %900 = vmax.xlane.f32.xlu2 %v858_v15 }
 0x1d5   :  { %v775_v57 = vpop.f32.mrf.mxu2 }
 0x1d6   :  { %v806_v11 = vpop.f32.mrf.mxu3 }
 0x1d7   :  { %v740_v29 = vpop.f32.mrf.mxu1  ;;  %v709_v35 = vpop.f32.mrf.mxu0 }
 0x1d8   :  { %v830_v2 = vadd.f32 %v709_v35, %v1619_v46  ;;  %v833_v46 = vadd.f32 %v740_v29, %v1621_v27  ;;  %v836_v27 = vadd.f32 %v770_v18, %v1601_v4  ;;  %v839_v4 = vadd.f32 %v801_v1, %v1603_v5 }
 0x1da   :  { %v867_v20 = vsel %vm845_vm4, %v830_v2, -inf  ;;  %v870_v39 = vsel %vm845_vm4, %v833_v46, -inf  ;;  %v873_v22 = vsel %vm845_vm4, %v836_v27, -inf  ;;  %v876_v3 = vsel %vm845_vm4, %v839_v4, -inf }
 0x1db   :  { %922 = vmax.xlane.f32.xlu1 %v869_v59  ;;  %902 = vmax.xlane.f32.xlu0 %v859_v31 }
 0x1dc   :  { %906 = vmax.xlane.f32.xlu2 %v861_v34 }
 0x1de   :  { %v808_v9 = vpop.f32.mrf.mxu3 }
 0x1df   :  { %v742_v19 = vpop.f32.mrf.mxu1  ;;  %v842_v17 = vadd.f32 %v808_v9, %v520_v33 }
 0x1e0   :  { %v834_v58 = vadd.f32 %v742_v19, %v1626_v62  ;;  %v838_v62 = vadd.f32 %v775_v57, %v1617_v40  ;;  %v841_v40 = vadd.f32 %v806_v11, %v518_v42  ;;  %v1247_v42 = vld [vmem:[%s1824_s2 + $0x8] sm:$0xff] }
 0x1e1   :  { %v879_v5 = vsel %vm845_vm4, %v842_v17, -inf  ;;  %1115 = vmatpush.bf16.msra.mxu0 %v1247_v42 }
 0x1e2   :  { %v871_v56 = vsel %vm845_vm4, %v834_v58, -inf  ;;  %v875_v38 = vsel %vm845_vm4, %v838_v62, -inf  ;;  %v878_v61 = vsel %vm845_vm4, %v841_v40, -inf  ;;  %v1246_v40 = vld [vmem:[%s1824_s2] sm:$0xff] }
 0x1e3   :  { %910 = vmax.xlane.f32.xlu1 %v863_v12  ;;  %908 = vmax.xlane.f32.xlu0 %v862_v16 }
 0x1e4   :  { %918 = vmax.xlane.f32.xlu2 %v867_v20 }
 0x1e5   :  { %1116 = vmatpush.bf16.msra.mxu0 %v1246_v40 }
 0x1eb   :  { %928 = vmax.xlane.f32.xlu1 %v872_v55  ;;  %926 = vmax.xlane.f32.xlu0 %v871_v56 }
 0x1ec   :  { %924 = vmax.xlane.f32.xlu2 %v870_v39 }
 0x1f3   :  { %934 = vmax.xlane.f32.xlu1 %v875_v38  ;;  %932 = vmax.xlane.f32.xlu0 %v874_v13 }
 0x1f4   :  { %930 = vmax.xlane.f32.xlu2 %v873_v22 }
 0x1fb   :  { %940 = vmax.xlane.f32.xlu1 %v878_v61  ;;  %938 = vmax.xlane.f32.xlu0 %v877_v21 }
 0x1fc   :  { %936 = vmax.xlane.f32.xlu2 %v876_v3 }
 0x204   :  { %942 = vmax.xlane.f32.xlu2 %v879_v5 }
 0x216   :  { %v881_v32 = vpop.xlane.xlu2 %880 }
 0x21e   :  { %v883_v43 = vpop.xlane.xlu0 %882  ;;  %v889_v25 = vpop.xlane.xlu1 %888 }
 0x21f   :  { %v944_v44 = vpack.c.bf16 %v883_v43, %v881_v32 }
 0x221   :  { %v984_v7 = vunpack.c.l.b16 %v944_v44  ;;  %v985_v45 = vunpack.c.h.b16 %v944_v44 }
 0x223   :  { %v1016_v15 = vperm.slane %v984_v7, %v1623_v52  ;;  %v1018_v50 = vperm.slane %v985_v45, %v1740_v0 }
 0x225   :  { %v1020_v29 = vsel %vm1019_vm5, %v1018_v50, %v1016_v15 }
 0x226   :  { %v897_v6 = vpop.xlane.xlu0 %896  ;;  %v891_v26 = vpop.xlane.xlu2 %890 }
 0x227   :  { %v946_v41 = vpack.c.bf16 %v891_v26, %v889_v25 }
 0x229   :  { %v988_v59 = vunpack.c.l.b16 %v946_v41  ;;  %v989_v31 = vunpack.c.h.b16 %v946_v41 }
 0x22b   :  { %v1029_v1 = vperm.slane %v988_v59, %v1623_v52  ;;  %v1030_v2 = vperm.slane %v989_v31, %v1740_v0 }
 0x22d   :  { %v1031_v20 = vsel %vm1019_vm5, %v1030_v2, %v1029_v1 }
 0x22e   :  { %v893_v51 = vpop.xlane.xlu1 %892  ;;  %v887_v28 = vpop.xlane.xlu0 %886 }
 0x22f   :  { %v885_v36 = vpop.xlane.xlu2 %884 }
 0x230   :  { %v945_v37 = vpack.c.bf16 %v887_v28, %v885_v36 }
 0x232   :  { %v986_v30 = vunpack.c.l.b16 %v945_v37  ;;  %v987_v47 = vunpack.c.h.b16 %v945_v37 }
 0x234   :  { %v1022_v10 = vperm.slane %v986_v30, %v1743_v24  ;;  %v1026_v18 = vperm.slane %v987_v47, %v1746_v63 }
 0x236   :  { %v1024_v34 = vsel %vm1023_vm6, %v1022_v10, %v1020_v29  ;;  %v899_v53 = vpop.xlane.xlu1 %898 }
 0x237   :  { %v1028_v35 = vsel %vm1027_vm7, %v1026_v18, %v1024_v34  ;;  %v895_v48 = vpop.xlane.xlu2 %894  ;;  %v948_v21 = vpack.c.bf16 %v899_v53, %v897_v6 }
 0x238   :  { %v947_v23 = vpack.c.bf16 %v895_v48, %v893_v51 }
 0x239   :  { %v992_v33 = vunpack.c.l.b16 %v948_v21  ;;  %v993_v17 = vunpack.c.h.b16 %v948_v21 }
 0x23a   :  { %v990_v8 = vunpack.c.l.b16 %v947_v23  ;;  %v991_v12 = vunpack.c.h.b16 %v947_v23 }
 0x23b   :  { %v1036_v45 = vperm.slane %v992_v33, %v1623_v52  ;;  %v1037_v51 = vperm.slane %v993_v17, %v1740_v0 }
 0x23c   :  { %v1032_v16 = vperm.slane %v990_v8, %v1743_v24  ;;  %v1034_v19 = vperm.slane %v991_v12, %v1746_v63 }
 0x23d   :  { %v1038_v34 = vsel %vm1019_vm5, %v1037_v51, %v1036_v45 }
 0x23e   :  { %v1033_v54 = vsel %vm1023_vm6, %v1032_v16, %v1031_v20  ;;  %v905_v58 = vpop.xlane.xlu1 %904  ;;  %v915_v46 = vpop.xlane.xlu0 %914 }
 0x23f   :  { %v1035_v49 = vsel %vm1027_vm7, %v1034_v19, %v1033_v54  ;;  %v913_v55 = vpop.xlane.xlu2 %912 }
 0x240   :  { %v1762_v56 = vsel %vm1078_vm8, %v1035_v49, %v1028_v35  ;;  %v952_v32 = vpack.c.bf16 %v915_v46, %v913_v55 }
 0x242   :  { %v1000_v37 = vunpack.c.l.b16 %v952_v32  ;;  %v1001_v50 = vunpack.c.h.b16 %v952_v32 }
 0x244   :  { %v1050_v1 = vperm.slane %v1000_v37, %v1623_v52  ;;  %v1051_v19 = vperm.slane %v1001_v50, %v1740_v0 }
 0x246   :  { %v917_v57 = vpop.xlane.xlu1 %916  ;;  %v921_v39 = vpop.xlane.xlu0 %920  ;;  %v1052_v42 = vsel %vm1019_vm5, %v1051_v19, %v1050_v1 }
 0x247   :  { %v901_v60 = vpop.xlane.xlu2 %900 }
 0x24e   :  { %v923_v62 = vpop.xlane.xlu1 %922  ;;  %v903_v27 = vpop.xlane.xlu0 %902 }
 0x24f   :  { %v907_v11 = vpop.xlane.xlu2 %906  ;;  %v949_v3 = vpack.c.bf16 %v903_v27, %v901_v60  ;;  %v954_v25 = vpack.c.bf16 %v923_v62, %v921_v39 }
 0x250   :  { %v950_v9 = vpack.c.bf16 %v907_v11, %v905_v58 }
 0x251   :  { %v994_v26 = vunpack.c.l.b16 %v949_v3  ;;  %v1004_v30 = vunpack.c.l.b16 %v954_v25  ;;  %v995_v47 = vunpack.c.h.b16 %v949_v3  ;;  %v1005_v2 = vunpack.c.h.b16 %v954_v25 }
 0x252   :  { %v996_v41 = vunpack.c.l.b16 %v950_v9  ;;  %v997_v7 = vunpack.c.h.b16 %v950_v9 }
 0x253   :  { %v1039_v18 = vperm.slane %v994_v26, %v1743_v24  ;;  %v1057_v20 = vperm.slane %v1004_v30, %v1623_v52  ;;  %v1041_v54 = vperm.slane %v995_v47, %v1746_v63  ;;  %v1058_v11 = vperm.slane %v1005_v2, %v1740_v0 }
 0x254   :  { %v1043_v29 = vperm.slane %v996_v41, %v1623_v52  ;;  %v1044_v59 = vperm.slane %v997_v7, %v1740_v0 }
 0x255   :  { %v1040_v46 = vsel %vm1023_vm6, %v1039_v18, %v1038_v34 }
 0x256   :  { %v911_v38 = vpop.xlane.xlu1 %910  ;;  %v909_v13 = vpop.xlane.xlu0 %908  ;;  %v1045_v49 = vsel %vm1019_vm5, %v1044_v59, %v1043_v29  ;;  %v1042_v40 = vsel %vm1027_vm7, %v1041_v54, %v1040_v46 }
 0x257   :  { %v919_v22 = vpop.xlane.xlu2 %918  ;;  %v951_v43 = vpack.c.bf16 %v911_v38, %v909_v13  ;;  %v1081_v26 = vsel %vm1080_vm9, %v1042_v40, %v1762_v56 }
 0x258   :  { %v953_v15 = vpack.c.bf16 %v919_v22, %v917_v57 }
 0x259   :  { %v998_v6 = vunpack.c.l.b16 %v951_v43  ;;  %v999_v53 = vunpack.c.h.b16 %v951_v43 }
 0x25a   :  { %v1002_v12 = vunpack.c.l.b16 %v953_v15  ;;  %v1003_v60 = vunpack.c.h.b16 %v953_v15 }
 0x25b   :  { %v1046_v8 = vperm.slane %v998_v6, %v1743_v24  ;;  %v1048_v39 = vperm.slane %v999_v53, %v1746_v63 }
 0x25c   :  { %v1053_v13 = vperm.slane %v1002_v12, %v1743_v24  ;;  %v1055_v9 = vperm.slane %v1003_v60, %v1746_v63 }
 0x25d   :  { %v1047_v38 = vsel %vm1023_vm6, %v1046_v8, %v1045_v49 }
 0x25e   :  { %v927_v14 = vpop.xlane.xlu0 %926  ;;  %v929_v61 = vpop.xlane.xlu1 %928  ;;  %v1049_v3 = vsel %vm1027_vm7, %v1048_v39, %v1047_v38  ;;  %v1054_v32 = vsel %vm1023_vm6, %v1053_v13, %v1052_v42 }
 0x25f   :  { %v925_v4 = vpop.xlane.xlu2 %924  ;;  %v1083_v45 = vsel %vm1082_vm10, %v1049_v3, %v1081_v26  ;;  %v1056_v37 = vsel %vm1027_vm7, %v1055_v9, %v1054_v32 }
 0x260   :  { %v955_v10 = vpack.c.bf16 %v927_v14, %v925_v4 }
 0x262   :  { %v1006_v58 = vunpack.c.l.b16 %v955_v10  ;;  %v1007_v22 = vunpack.c.h.b16 %v955_v10 }
 0x264   :  { %v1060_v14 = vperm.slane %v1006_v58, %v1743_v24  ;;  %v1062_v43 = vperm.slane %v1007_v22, %v1746_v63 }
 0x266   :  { %v933_v5 = vpop.xlane.xlu0 %932  ;;  %v935_v28 = vpop.xlane.xlu1 %934 }
 0x267   :  { %v931_v44 = vpop.xlane.xlu2 %930  ;;  %v957_v31 = vpack.c.bf16 %v935_v28, %v933_v5  ;;  %v1059_v5 = vsel %vm1019_vm5, %v1058_v11, %v1057_v20 }
 0x268   :  { %v956_v36 = vpack.c.bf16 %v931_v44, %v929_v61  ;;  %v1061_v41 = vsel %vm1023_vm6, %v1060_v14, %v1059_v5 }
 0x269   :  { %v1010_v55 = vunpack.c.l.b16 %v957_v31  ;;  %v1011_v33 = vunpack.c.h.b16 %v957_v31  ;;  %v1063_v56 = vsel %vm1027_vm7, %v1062_v43, %v1061_v41 }
 0x26a   :  { %v1008_v35 = vunpack.c.l.b16 %v956_v36  ;;  %v1009_v48 = vunpack.c.h.b16 %v956_v36 }
 0x26b   :  { %v1067_v4 = vperm.slane %v1010_v55, %v1743_v24  ;;  %v1069_v6 = vperm.slane %v1011_v33, %v1746_v63 }
 0x26c   :  { %v1064_v62 = vperm.slane %v1008_v35, %v1623_v52  ;;  %v1065_v27 = vperm.slane %v1009_v48, %v1740_v0 }
 0x26e   :  { %v939_v23 = vpop.xlane.xlu0 %938  ;;  %v1066_v17 = vsel %vm1019_vm5, %v1065_v27, %v1064_v62  ;;  %v941_v44 = vpop.xlane.xlu1 %940 }
 0x26f   :  { %v937_v16 = vpop.xlane.xlu2 %936  ;;  %v1068_v51 = vsel %vm1023_vm6, %v1067_v4, %v1066_v17 }
 0x270   :  { %v958_v57 = vpack.c.bf16 %v939_v23, %v937_v16  ;;  %v1070_v30 = vsel %vm1027_vm7, %v1069_v6, %v1068_v51 }
 0x272   :  { %v1012_v61 = vunpack.c.l.b16 %v958_v57  ;;  %v1013_v21 = vunpack.c.h.b16 %v958_v57 }
 0x274   :  { %v1071_v28 = vperm.slane %v1012_v61, %v1623_v52  ;;  %v1072_v36 = vperm.slane %v1013_v21, %v1740_v0  ;;  %v1085_v52 = vsel %vm1084_vm11, %v1056_v37, %v1083_v45 }
 0x275   :  { %v1087_v18 = vsel %vm1086_vm12, %v1063_v56, %v1085_v52 }
 0x276   :  { %v1073_v0 = vsel %vm1019_vm5, %v1072_v36, %v1071_v28  ;;  %v1089_v59 = vsel %vm1088_vm13, %v1070_v30, %v1087_v18 }
 0x277   :  { %v943_v25 = vpop.xlane.xlu2 %942 }
 0x278   :  { %v959_v7 = vpack.c.bf16 %v943_v25, %v941_v44 }
 0x27a   :  { %v1014_v15 = vunpack.c.l.b16 %v959_v7  ;;  %v1015_v50 = vunpack.c.h.b16 %v959_v7 }
 0x27c   :  { %v1074_v47 = vperm.slane %v1014_v15, %v1743_v24  ;;  %v1076_v10 = vperm.slane %v1015_v50, %v1746_v63  ;;  %v1251_v24 = vld [vmem:[%s1825_s3] ss:$0 sm:$0xff]  ;;  %s1149_s3 = sshll.u32 %s1826_s4, 4  ;;  %s1150_s3 = int_to_ptr.hbm [resolvable:$true] %s1149_s3 }
 0x27e   :  { %v1075_v29 = vsel %vm1023_vm6, %v1074_v47, %v1073_v0 }
 0x27f   :  { %v1077_v31 = vsel %vm1027_vm7, %v1076_v10, %v1075_v29 }
 0x280   :  { %v1091_v34 = vsel %vm1090_vm14, %v1077_v31, %v1089_v59 }
 0x281   :  { %v1092_v53 = vpack.c.b16 %v1091_v34, %v1091_v34 }
 0x283   :  { %1238 = vmatmul.msk.bf16.vlgmr.msra.gmra.mxu0 %vm1105_vm15, %v1092_v53 }
 0x300   :  { %v1118_v63 = vpop.f32.mrf.mxu0 }
 0x301   :  { %v1119_v35 = vadd.f32 %v1251_v24, %v1118_v63 }
 0x303   :  { %v1239_v48 = vmul.f32 -1.442695, %v1119_v35 }
 0x305   :  { %1252 = vpow2.f32 %v1239_v48 }
 0x308   :  { %v1120_v23 = vpop.f32.mrf.mxu0 }
 0x30b   :  { %v1253_v1 = vpop.eup %1252 }
 0x30c   :  { %v1125_v2 = vadd.f32 1.0, %v1253_v1 }
 0x30e   :  { %1254 = vrcp.f32 %v1125_v2  ;;  %v1137_v19 = vand.u32 2147483648, %v1125_v2  ;;  %v1135_v54 = vand.u32 2147483647, %v1125_v2  ;;  %vm1131_vm1 = vweird.f32 %v1125_v2 }
 0x310   :  { %v1138_v46 = vor.u32 1.1754944e-38, %v1137_v19  ;;  %vm1136_vm3 = vcmp.eq.f32.partialorder %v1135_v54, 8.507059e+37 }
 0x314   :  { %v1255_v8 = vpop.eup %1254 }
 0x315   :  { %v1127_v12 = vmul.f32 %v1255_v8, %v1125_v2  ;;  %vm1132_vm0 = vweird.f32 %v1255_v8 }
 0x316   :  { %vm1133_vm2 = vmor %vm1131_vm1, %vm1132_vm0 }
 0x317   :  { %v1128_v16 = vsub.f32 1.0, %v1127_v12 }
 0x319   :  { %v1129_v20 = vmul.f32 %v1255_v8, %v1128_v16 }
 0x31b   :  { %v1130_v58 = vadd.f32 %v1255_v8, %v1129_v20 }
 0x31d   :  { %v1134_v49 = vsel %vm1133_vm2, %v1255_v8, %v1130_v58 }
 0x31e   :  { %v1139_v55 = vsel %vm1136_vm3, %v1138_v46, %v1134_v49 }
 0x31f   :  { %1141 = vst [vmem:[#allocation2] sm:$0xff] %v1139_v55 }
 0x320   :  { %1152 = dma.vmem_to_hbm [thread:$0]  %s1148_s29, 128, %s1150_s3, [#allocation3]  }
 0x321   :  { %1280 = dma.done.wait [#allocation3], 128  }
 0x322   :  { %1281 = vsyncadd [#allocation3], 4294967168 }
 0x323   :  { %1157 = vsyncpa [#allocation3], 1 }

</bundles_post_ra>
